<compile_context>
chip_gen: v7x
topology: tpu7x:2x2x1
jax: 0.10.0
libtpu: 0.0.40
codegen_flags: <defaults>
</compile_context>

<pallas_src>
import jax
import jax.numpy as jnp
from jax.experimental import pallas as pl
from jax.experimental.pallas import tpu as pltpu

LANE = 128            # vreg lane width (fast axis)
SUBLANE = 8           # f32 sublane count
MAX_TILE_ROWS = 4096  # 4096 * 128 * 4B = 2 MiB per stream per block
MIN_SPLIT_ROWS = 256  # only split across 2 grid steps if each half >= 128 KiB/stream


def _round_up(v, m):
    return ((v + m - 1) // m) * m


def _sigmoid(v):
    # tanh formulation: single EUP op per sigmoid, mathematically identical
    # to the logistic 1/(1+exp(-v)) but avoids the VPU-lowered f32 divide.
    return 0.5 * jnp.tanh(0.5 * v) + 0.5


def _sigmoid_add_sigmoid_kernel(x_ref, y_ref, o_ref):
    x = x_ref[...]
    y = y_ref[...]
    o_ref[...] = _sigmoid(_sigmoid(y) + _sigmoid(x))


def sigmoid_add_sigmoid(x: jax.Array, y: jax.Array) -> jax.Array:
    assert x.shape == y.shape and x.dtype == y.dtype
    orig_shape = x.shape
    n = x.size

    # Lane-dense (rows, 128) slab; rows rounded up to a sublane multiple.
    rows = _round_up(pl.cdiv(n, LANE), SUBLANE)

    # Tile selection (static, no shrinking search loop):
    #  - big inputs:    fixed 4096-row (2 MiB/stream) blocks -> roofline regime.
    #  - medium inputs: exactly 2 blocks so both v7x TCs get work under
    #                   dimension_semantics=("parallel",).
    #  - small inputs:  one block, one grid step (per-step overhead dominates).
    if rows >= 2 * MAX_TILE_ROWS:
        tile_rows = MAX_TILE_ROWS
    elif rows >= 2 * MIN_SPLIT_ROWS:
        tile_rows = _round_up(pl.cdiv(rows, 2), SUBLANE)
    else:
        tile_rows = rows  # already sublane-aligned

    grid_n = pl.cdiv(rows, tile_rows)
    padded_rows = grid_n * tile_rows
    pad = padded_rows * LANE - n

    xf = x.reshape(-1)
    yf = y.reshape(-1)
    if pad:  # skip the no-op pad when the input already tiles exactly
        xf = jnp.pad(xf, (0, pad))
        yf = jnp.pad(yf, (0, pad))
    xf = xf.reshape(padded_rows, LANE)
    yf = yf.reshape(padded_rows, LANE)

    out = pl.pallas_call(
        _sigmoid_add_sigmoid_kernel,
        out_shape=jax.ShapeDtypeStruct((padded_rows, LANE), x.dtype),
        grid_spec=pltpu.PrefetchScalarGridSpec(
            num_scalar_prefetch=0,
            grid=(grid_n,),
            in_specs=[
                pl.BlockSpec((tile_rows, LANE), lambda i: (i, 0)),
                pl.BlockSpec((tile_rows, LANE), lambda i: (i, 0)),
            ],
            out_specs=pl.BlockSpec((tile_rows, LANE), lambda i: (i, 0)),
        ),
        compiler_params=pltpu.CompilerParams(
            dimension_semantics=("parallel",),
            # 3 streams x 2 buffers x <=2 MiB = <=12 MiB; 32 MiB leaves ample
            # headroom on every chip (v7x has only 64 MiB physical VMEM).
            vmem_limit_bytes=32 << 20,
        ),
    )(xf, yf)

    out = out.reshape(-1)
    if pad:  # skip the no-op slice when there was no padding
        out = out[:n]
    return out.reshape(orig_shape)


if __name__ == "__main__":
    key = jax.random.PRNGKey(0)
    kx, ky = jax.random.split(key)
    shape = (2, 4, 16, 16)  # NCHW, matches the PyTorch test module
    x = jax.random.normal(kx, shape, dtype=jnp.float32)
    y = jax.random.normal(ky, shape, dtype=jnp.float32)

    out = sigmoid_add_sigmoid(x, y)
    jax.block_until_ready(out)

    # Reference check against plain JAX.
    ref = jax.nn.sigmoid(jax.nn.sigmoid(y) + jax.nn.sigmoid(x))
    assert out.shape == ref.shape
    assert jnp.allclose(out, ref, atol=1e-5, rtol=1e-5)

    print("KERNEL_OK")
</pallas_src>

<mosaic_0001>
module attributes {stable_mosaic.version = 11 : i64} {
  func.func @_sigmoid_add_sigmoid_kernel(%arg0: i32, %arg1: memref<16x128xf32, #tpu.memory_space<vmem>>, %arg2: memref<16x128xf32, #tpu.memory_space<vmem>>, %arg3: memref<16x128xf32, #tpu.memory_space<vmem>>) attributes {dimension_semantics = [#tpu.dimension_semantics<parallel>], iteration_bounds = array<i64: 1>, scalar_prefetch = 0 : i64, scratch_operands = 0 : i64, tpu.core_type = #tpu.core_type<tc>, window_params = [{transform_indices = @transform_0, window_bounds = array<i64: 16, 128>}, {transform_indices = @transform_1, window_bounds = array<i64: 16, 128>}, {transform_indices = @transform_2, window_bounds = array<i64: 16, 128>}]} {
    %c0 = arith.constant 0 : index
    %c0_0 = arith.constant 0 : index
    %0 = vector.load %arg1[%c0, %c0_0] : memref<16x128xf32, #tpu.memory_space<vmem>>, vector<16x128xf32>
    %c0_1 = arith.constant 0 : index
    %c0_2 = arith.constant 0 : index
    %1 = vector.load %arg2[%c0_1, %c0_2] : memref<16x128xf32, #tpu.memory_space<vmem>>, vector<16x128xf32>
    %cst = arith.constant 5.000000e-01 : f32
    %2 = vector.broadcast %cst : f32 to vector<16x128xf32>
    %3 = arith.mulf %2, %1 : vector<16x128xf32>
    %4 = math.tanh %3 : vector<16x128xf32>
    %cst_3 = arith.constant 5.000000e-01 : f32
    %5 = vector.broadcast %cst_3 : f32 to vector<16x128xf32>
    %6 = arith.mulf %5, %4 : vector<16x128xf32>
    %cst_4 = arith.constant 5.000000e-01 : f32
    %7 = vector.broadcast %cst_4 : f32 to vector<16x128xf32>
    %8 = arith.addf %6, %7 : vector<16x128xf32>
    %cst_5 = arith.constant 5.000000e-01 : f32
    %9 = vector.broadcast %cst_5 : f32 to vector<16x128xf32>
    %10 = arith.mulf %9, %0 : vector<16x128xf32>
    %11 = math.tanh %10 : vector<16x128xf32>
    %cst_6 = arith.constant 5.000000e-01 : f32
    %12 = vector.broadcast %cst_6 : f32 to vector<16x128xf32>
    %13 = arith.mulf %12, %11 : vector<16x128xf32>
    %cst_7 = arith.constant 5.000000e-01 : f32
    %14 = vector.broadcast %cst_7 : f32 to vector<16x128xf32>
    %15 = arith.addf %13, %14 : vector<16x128xf32>
    %16 = arith.addf %8, %15 : vector<16x128xf32>
    %cst_8 = arith.constant 5.000000e-01 : f32
    %17 = vector.broadcast %cst_8 : f32 to vector<16x128xf32>
    %18 = arith.mulf %17, %16 : vector<16x128xf32>
    %19 = math.tanh %18 : vector<16x128xf32>
    %cst_9 = arith.constant 5.000000e-01 : f32
    %20 = vector.broadcast %cst_9 : f32 to vector<16x128xf32>
    %21 = arith.mulf %20, %19 : vector<16x128xf32>
    %cst_10 = arith.constant 5.000000e-01 : f32
    %22 = vector.broadcast %cst_10 : f32 to vector<16x128xf32>
    %23 = arith.addf %21, %22 : vector<16x128xf32>
    %c0_11 = arith.constant 0 : index
    %c0_12 = arith.constant 0 : index
    %24 = vector.load %arg3[%c0_11, %c0_12] : memref<16x128xf32, #tpu.memory_space<vmem>>, vector<16x128xf32>
    tpu.vector_store %arg3[%c0_11, %c0_12], %23 {strides = array<i32>} : memref<16x128xf32, #tpu.memory_space<vmem>>, vector<16x128xf32>,
    return
  }
  func.func @transform_0(%arg0: i32) -> (i32, i32) {
    %c0_i32 = arith.constant 0 : i32
    %c0_i32_0 = arith.constant 0 : i32
    return %arg0, %c0_i32 : i32, i32
  }
  func.func @transform_1(%arg0: i32) -> (i32, i32) {
    %c0_i32 = arith.constant 0 : i32
    %c0_i32_0 = arith.constant 0 : i32
    return %arg0, %c0_i32 : i32, i32
  }
  func.func @transform_2(%arg0: i32) -> (i32, i32) {
    %c0_i32 = arith.constant 0 : i32
    %c0_i32_0 = arith.constant 0 : i32
    return %arg0, %c0_i32 : i32, i32
  }
}

</mosaic_0001>

<bundles_post_ra>
// kernel: tpu_custom_call.1
= control target key start
LH: loop header
LB: loop body
LE: loop exit
PB: predicated region body
PF: predicated region fallthrough
CT: control target
= control target key end

     0   :  { %7 = vsyncpa [#allocation3], 0  ;;  %s244_s0 = inlined_call_operand.hbm [shape: f32[16,128], index: 0, kind: input, shape index: {}]   ;;  %s245_s1 = inlined_call_operand.hbm [shape: f32[16,128], index: 1, kind: input, shape index: {}]   ;;  %s246_s2 = inlined_call_operand.hbm [shape: f32[16,128], index: 2, kind: output, shape index: {}]  }
   0x1   :  { %8 = vsyncpa [#allocation6], 0 }
   0x2   :  { %9 = vsyncpa [#allocation4], 0  ;;  %s179_s9 = smov [#allocation2]   ;;  %s107_s13 = scalar_lea.hbm %s244_s0, 256 }
   0x3   :  { %s15_s10 = sshll.u32 %s179_s9, 4  ;;  %p108_p0 = scmp.ne.s32.totalorder %s244_s0, %s107_s13  ;;  %s16_s10 = int_to_ptr.vmem [resolvable:$true] %s15_s10 }
   0x4   :  { %p111_p1 = scmp.lt.u32.totalorder %s107_s13, %s244_s0 }
   0x6   :  { %p113_p2 = pnand %p111_p1, %p108_p0 }
   0x8   :  { %116 = shalt.err (!%p113_p2)
}
   0x9   :  { %s117_s18 = scalar_lea.vmem %s16_s10, 256  ;;  %p122_p4 = scmp.lt.s32.totalorder %s16_s10, %s16_s10 }
   0xa   :  { %p118_p3 = scmp.ne.s32.totalorder %s16_s10, %s117_s18  ;;  %p123_p5 = scmp.lt.s32.totalorder %s117_s18, %s117_s18 }
   0xc   :  { %p124_p6 = por %p123_p5, %p122_p4 }
   0xe   :  { %p125_p7 = pnand %p124_p6, %p118_p3 }
  0x10   :  { %128 = shalt.err (!%p125_p7)
}
  0x11   :  { %s180_s19 = smov 128   ;;  %s181_s20 = smov 8  }
  0x12   :  { %21 = dma.hbm_to_vmem [thread:$0]  %s244_s0, 256, %s16_s10, [#allocation3], %s180_s19, %s180_s19, %s181_s20  }
  0x13   :  { %s182_s23 = smov [#allocation5]   ;;  %s129_s27 = scalar_lea.hbm %s245_s1, 256 }
  0x14   :  { %s27_s24 = sshll.u32 %s182_s23, 4  ;;  %p130_p8 = scmp.ne.s32.totalorder %s245_s1, %s129_s27  ;;  %s28_s24 = int_to_ptr.vmem [resolvable:$true] %s27_s24 }
  0x15   :  { %p133_p9 = scmp.lt.u32.totalorder %s129_s27, %s245_s1 }
  0x17   :  { %p135_p10 = pnand %p133_p9, %p130_p8 }
  0x19   :  { %138 = shalt.err (!%p135_p10)
}
  0x1a   :  { %s139_s4 = scalar_lea.vmem %s28_s24, 256  ;;  %p144_p12 = scmp.lt.s32.totalorder %s28_s24, %s28_s24 }
  0x1b   :  { %p140_p11 = scmp.ne.s32.totalorder %s28_s24, %s139_s4  ;;  %p145_p13 = scmp.lt.s32.totalorder %s139_s4, %s139_s4 }
  0x1d   :  { %p146_p0 = por %p145_p13, %p144_p12 }
  0x1f   :  { %p147_p1 = pnand %p146_p0, %p140_p11 }
  0x21   :  { %150 = shalt.err (!%p147_p1)
}
  0x22   :  { %33 = dma.hbm_to_vmem [thread:$0]  %s245_s1, 256, %s28_s24, [#allocation6], %s180_s19, %s180_s19, %s181_s20  }
  0x23   :  { %173 = dma.done.wait [#allocation3], 256  }
  0x24   :  { %174 = vsyncadd [#allocation3], 4294967040 }
  0x25   :  { %175 = dma.done.wait [#allocation6], 256  }
  0x26   :  { %176 = vsyncadd [#allocation6], 4294967040  ;;  %v40_v0 = vld [vmem:[#allocation2] sm:$0xff]  ;;  %v42_v1 = vld [vmem:[#allocation5] sm:$0xff]  ;;  %s183_s1 = smov [#allocation7]  }
  0x27   :  { %v41_v2 = vld [vmem:[#allocation2 + $0x8] sm:$0xff]  ;;  %v44_v3 = vmul.f32 0.5, %v42_v1  ;;  %v52_v4 = vmul.f32 0.5, %v40_v0  ;;  %v43_v5 = vld [vmem:[#allocation5 + $0x8] sm:$0xff]  ;;  %s77_s6 = sshll.u32 %s183_s1, 4  ;;  %s78_s6 = int_to_ptr.vmem [resolvable:$true] %s77_s6 }
  0x28   :  { %v45_v6 = vmul.f32 0.5, %v43_v5  ;;  %v53_v7 = vmul.f32 0.5, %v41_v2  ;;  %s151_s7 = scalar_lea.vmem %s78_s6, 256  ;;  %p156_p3 = scmp.lt.s32.totalorder %s78_s6, %s78_s6 }
  0x29   :  { %95 = vtanh.f32 %v44_v3  ;;  %p152_p2 = scmp.ne.s32.totalorder %s78_s6, %s151_s7  ;;  %p157_p4 = scmp.lt.s32.totalorder %s151_s7, %s151_s7 }
  0x2a   :  { %97 = vtanh.f32 %v52_v4 }
  0x2b   :  { %99 = vtanh.f32 %v45_v6  ;;  %p158_p5 = por %p157_p4, %p156_p3 }
  0x2c   :  { %101 = vtanh.f32 %v53_v7 }
  0x2d   :  { %p159_p6 = pnand %p158_p5, %p152_p2 }
  0x33   :  { %v96_v8 = vpop.eup %95 }
  0x34   :  { %v98_v9 = vpop.eup %97  ;;  %v48_v10 = vmul.f32 0.5, %v96_v8 }
  0x35   :  { %v100_v11 = vpop.eup %99  ;;  %v56_v12 = vmul.f32 0.5, %v98_v9 }
  0x36   :  { %v102_v13 = vpop.eup %101  ;;  %v50_v14 = vadd.f32 0.5, %v48_v10  ;;  %v49_v15 = vmul.f32 0.5, %v100_v11 }
  0x37   :  { %v58_v16 = vadd.f32 0.5, %v56_v12  ;;  %v57_v17 = vmul.f32 0.5, %v102_v13 }
  0x38   :  { %v51_v18 = vadd.f32 0.5, %v49_v15 }
  0x39   :  { %v60_v19 = vadd.f32 %v58_v16, %v50_v14  ;;  %v59_v20 = vadd.f32 0.5, %v57_v17 }
  0x3b   :  { %v62_v21 = vmul.f32 0.5, %v60_v19  ;;  %v61_v22 = vadd.f32 %v59_v20, %v51_v18 }
  0x3d   :  { %103 = vtanh.f32 %v62_v21  ;;  %v63_v23 = vmul.f32 0.5, %v61_v22 }
  0x3f   :  { %105 = vtanh.f32 %v63_v23 }
  0x47   :  { %v104_v24 = vpop.eup %103 }
  0x48   :  { %v66_v25 = vmul.f32 0.5, %v104_v24 }
  0x49   :  { %v106_v26 = vpop.eup %105 }
  0x4a   :  { %v68_v27 = vadd.f32 0.5, %v66_v25  ;;  %v67_v28 = vmul.f32 0.5, %v106_v26 }
  0x4c   :  { %70 = vst [vmem:[#allocation7] sm:$0xff] %v68_v27  ;;  %v69_v29 = vadd.f32 0.5, %v67_v28 }
  0x4e   :  { %71 = vst [vmem:[#allocation7 + $0x8] sm:$0xff] %v69_v29 }
  0x4f   :  { %162 = shalt.err (!%p159_p6)
}
  0x50   :  { %s163_s10 = scalar_lea.hbm %s246_s2, 256 }
  0x51   :  { %p164_p7 = scmp.ne.s32.totalorder %s246_s2, %s163_s10  ;;  %p167_p8 = scmp.lt.u32.totalorder %s163_s10, %s246_s2 }
  0x53   :  { %p169_p9 = pnand %p167_p8, %p164_p7 }
  0x55   :  { %172 = shalt.err (!%p169_p9)
}
  0x56   :  { %83 = dma.vmem_to_hbm [thread:$0]  %s78_s6, 256, %s246_s2, [#allocation4], %s180_s19, %s180_s19, %s181_s20  }
  0x57   :  { %177 = dma.done.wait [#allocation4], 256  }
  0x58   :  { %178 = vsyncadd [#allocation4], 4294967040 }
  0x59   :  { %87 = vsyncpa [#allocation3], 1 }
  0x5a   :  { %88 = vsyncpa [#allocation6], 1 }
  0x5b   :  { %89 = vsyncpa [#allocation4], 1 }

</bundles_post_ra>
